<compile_context>
chip_gen: v5e
topology: v5e:2x2
jax: 0.10.0
libtpu: 0.0.40
codegen_flags: <defaults>
</compile_context>

<pallas_src>
import functools

import jax
import jax.numpy as jnp
from jax.experimental import pallas as pl
from jax.experimental.pallas import tpu as pltpu


# ---------------------------------------------------------------------------
# Pallas kernel: fused encoder + decoder over a (C, TILE_PIX) slab of pixels.
# All weights are pre-transposed so the pixel axis is the lane axis throughout.
# ---------------------------------------------------------------------------
def _autoencoder_kernel(x_ref,                         # (1, C, TP)  input dtype
                        w1t_ref, b1_ref,               # (HID, C) bf16, (HID, 1) f32
                        w23t_ref, b23_ref,             # (HID, HID) bf16, (HID, 1) f32
                        w4t_ref, b4_ref,               # (C, HID) bf16, (C, 1) f32
                        o_ref):                        # (1, C, TP)
    # bf16 operands feed the MXU natively; accumulation is f32.
    x = x_ref[0].astype(jnp.bfloat16)                  # (C, TP)

    # encoder conv1 + ReLU (bias + ReLU in f32)
    h = jnp.dot(w1t_ref[...], x, preferred_element_type=jnp.float32) + b1_ref[...]
    h = jnp.maximum(h, 0.0).astype(jnp.bfloat16)

    # folded (encoder conv2 -> decoder conv1) + ReLU
    g = jnp.dot(w23t_ref[...], h, preferred_element_type=jnp.float32) + b23_ref[...]
    g = jnp.maximum(g, 0.0).astype(jnp.bfloat16)

    # decoder conv2
    y = jnp.dot(w4t_ref[...], g, preferred_element_type=jnp.float32) + b4_ref[...]

    o_ref[0] = y.astype(o_ref.dtype)


# ---------------------------------------------------------------------------
# Tile selection: 128-multiple lane tiles, >= ~target_steps grid steps,
# clamped by a per-step VMEM footprint budget.
# ---------------------------------------------------------------------------
def _choose_pixel_tile(P, N, C, hid, in_itemsize, out_itemsize,
                       max_tile=1024, lane=128, target_steps=8,
                       vmem_budget_bytes=24 << 20):
    if P <= lane:
        # Tiny plane: one (possibly ragged) tile; the masked store is negligible.
        return P
    groups = pl.cdiv(P, lane)                                   # 128-lane groups
    want_tiles = min(groups, max(1, pl.cdiv(target_steps, max(N, 1))))
    tp = min(pl.cdiv(groups, want_tiles) * lane, max_tile)
    tp = max(tp, lane)

    def footprint(t):
        slabs = 2 * C * t * (in_itemsize + out_itemsize)        # dbl-buffered in + out
        interm = 2 * hid * t * (4 + 2)                          # f32 h/g + bf16 copies
        return slabs + interm

    while tp > lane and footprint(tp) > vmem_budget_bytes:
        tp -= lane
    return tp


# ---------------------------------------------------------------------------
# Wrapper: NCHW glue (reshape only, no transpose, no pad) + pallas_call.
# ---------------------------------------------------------------------------
@functools.partial(jax.jit, static_argnames=("max_tile_pix",))
def compression_model_forward(x_nchw, params, max_tile_pix=1024):
    """Run the fused encoder->decoder on an NCHW input."""
    w1, b1, w2, b2, w3, b3, w4, b4 = params
    N, C, H, W = x_nchw.shape
    P = H * W
    hid = w1.shape[1]

    # Free reshape: NCHW is already pixel-contiguous per (n, c) slice.
    x = x_nchw.reshape(N, C, P)

    # Fold the latent bottleneck (exact; no nonlinearity between w2 and w3).
    w2f = w2.astype(jnp.float32)
    w3f = w3.astype(jnp.float32)
    w23 = jnp.dot(w2f, w3f, preferred_element_type=jnp.float32)          # (hid, hid)
    b23 = jnp.dot(b2.astype(jnp.float32), w3f,
                  preferred_element_type=jnp.float32) + b3.astype(jnp.float32)

    # Transposed weights (pixels stay on the lane axis of every matmul),
    # cast consistently: weights bf16 for the MXU, biases f32 for the VPU adds.
    w1t = w1.T.astype(jnp.bfloat16)          # (hid, C)
    w23t = w23.T.astype(jnp.bfloat16)        # (hid, hid)
    w4t = w4.T.astype(jnp.bfloat16)          # (C, hid)
    b1c = b1.astype(jnp.float32).reshape(hid, 1)
    b23c = b23.reshape(hid, 1)
    b4c = b4.astype(jnp.float32).reshape(C, 1)

    out_dtype = x_nchw.dtype
    in_isz = jnp.dtype(x_nchw.dtype).itemsize
    out_isz = jnp.dtype(out_dtype).itemsize

    tp = _choose_pixel_tile(P, N, C, hid, in_isz, out_isz, max_tile=max_tile_pix)
    grid = (N, pl.cdiv(P, tp))   # ragged last tile handled by Pallas edge masking

    # Explicit scoped-VMEM limit with headroom (v7x physical VMEM = 64 MiB).
    weight_bytes = 2 * ((hid * C + hid * hid + C * hid) * 2 + (2 * hid + C) * 4)
    step_bytes = (2 * C * tp * (in_isz + out_isz)
                  + 2 * hid * tp * (4 + 2)
                  + weight_bytes)
    vmem_limit = int(min(48 << 20, max(32 << 20, 2 * step_bytes)))

    const = lambda shape: pl.BlockSpec(shape, lambda n, p: (0, 0))

    out = pl.pallas_call(
        _autoencoder_kernel,
        out_shape=jax.ShapeDtypeStruct((N, C, P), out_dtype),
        grid_spec=pltpu.PrefetchScalarGridSpec(
            num_scalar_prefetch=0,
            grid=grid,
            in_specs=[
                pl.BlockSpec((1, C, tp), lambda n, p: (n, 0, p)),   # x slab
                const((hid, C)), const((hid, 1)),                   # w1^T, b1
                const((hid, hid)), const((hid, 1)),                 # w23^T, b23
                const((C, hid)), const((C, 1)),                     # w4^T, b4
            ],
            out_specs=pl.BlockSpec((1, C, tp), lambda n, p: (n, 0, p)),
        ),
        compiler_params=pltpu.CompilerParams(
            dimension_semantics=("parallel", "parallel"),
            vmem_limit_bytes=vmem_limit),
    )(x, w1t, b1c, w23t, b23c, w4t, b4c)

    return out.reshape(N, C, H, W)


# ---------------------------------------------------------------------------
# Deterministic parameter init (kaiming-ish uniform, like nn.Conv2d default).
# ---------------------------------------------------------------------------
def init_params(key, in_channels, hidden, latent, dtype=jnp.float32):
    ks = jax.random.split(key, 8)

    def lin(kw, kb, fan_in, fan_out):
        bound = 1.0 / jnp.sqrt(jnp.asarray(fan_in, jnp.float32))
        w = jax.random.uniform(kw, (fan_in, fan_out), dtype, -bound, bound)
        b = jax.random.uniform(kb, (fan_out,), dtype, -bound, bound)
        return w, b

    w1, b1 = lin(ks[0], ks[1], in_channels, hidden)   # encoder conv1 (1x1)
    w2, b2 = lin(ks[2], ks[3], hidden, latent)        # encoder conv2 (1x1)
    w3, b3 = lin(ks[4], ks[5], latent, hidden)        # decoder conv1 (1x1)
    w4, b4 = lin(ks[6], ks[7], hidden, in_channels)   # decoder conv2 (1x1)
    return (w1, b1, w2, b2, w3, b3, w4, b4)


# ---------------------------------------------------------------------------
# Pure-JAX f32 reference (un-folded 4-matmul formulation) for correctness.
# ---------------------------------------------------------------------------
def reference_forward(x_nchw, params):
    w1, b1, w2, b2, w3, b3, w4, b4 = params
    N, C, H, W = x_nchw.shape
    x = jnp.transpose(x_nchw, (0, 2, 3, 1)).reshape(-1, C)
    h = jnp.maximum(x @ w1 + b1, 0.0)
    z = h @ w2 + b2
    g = jnp.maximum(z @ w3 + b3, 0.0)
    y = g @ w4 + b4
    return jnp.transpose(y.reshape(N, H, W, C), (0, 3, 1, 2))


if __name__ == "__main__":
    key = jax.random.PRNGKey(0)
    k_x, k_p = jax.random.split(key)

    # Small hyperspectral-ish shapes: batch=2, channels=32, spatial=16x16.
    N, C, H, W = 2, 32, 16, 16
    HIDDEN, LATENT = 64, 8

    x = jax.random.normal(k_x, (N, C, H, W), jnp.float32)
    params = init_params(k_p, C, HIDDEN, LATENT)

    out = compression_model_forward(x, params)
    out = jax.block_until_ready(out)

    ref = reference_forward(x, params)
    assert out.shape == (N, C, H, W)
    # Kernel uses bf16 MXU operands with f32 accumulation -> loose tolerance
    # against the pure-f32 reference.
    assert jnp.allclose(out, ref, atol=5e-2, rtol=5e-2), "mismatch vs reference"

    print("KERNEL_OK")
</pallas_src>

<mosaic_0001>
module attributes {stable_mosaic.version = 11 : i64} {
  func.func @_autoencoder_kernel(%arg0: i32, %arg1: i32, %arg2: memref<1x32x128xf32, #tpu.memory_space<vmem>>, %arg3: memref<64x32xbf16, #tpu.memory_space<vmem>>, %arg4: memref<64x1xf32, #tpu.memory_space<vmem>>, %arg5: memref<64x64xbf16, #tpu.memory_space<vmem>>, %arg6: memref<64x1xf32, #tpu.memory_space<vmem>>, %arg7: memref<32x64xbf16, #tpu.memory_space<vmem>>, %arg8: memref<32x1xf32, #tpu.memory_space<vmem>>, %arg9: memref<1x32x128xf32, #tpu.memory_space<vmem>>) attributes {dimension_semantics = [#tpu.dimension_semantics<parallel>, #tpu.dimension_semantics<parallel>], iteration_bounds = array<i64: 2, 2>, scalar_prefetch = 0 : i64, scratch_operands = 0 : i64, tpu.core_type = #tpu.core_type<tc>, window_params = [{transform_indices = @transform_0, window_bounds = array<i64: 1, 32, 128>}, {pipeline_mode = #tpu.pipeline_mode<synchronous>, transform_indices = @transform_1, window_bounds = array<i64: 64, 32>}, {pipeline_mode = #tpu.pipeline_mode<synchronous>, transform_indices = @transform_2, window_bounds = array<i64: 64, 1>}, {pipeline_mode = #tpu.pipeline_mode<synchronous>, transform_indices = @transform_3, window_bounds = array<i64: 64, 64>}, {pipeline_mode = #tpu.pipeline_mode<synchronous>, transform_indices = @transform_4, window_bounds = array<i64: 64, 1>}, {pipeline_mode = #tpu.pipeline_mode<synchronous>, transform_indices = @transform_5, window_bounds = array<i64: 32, 64>}, {pipeline_mode = #tpu.pipeline_mode<synchronous>, transform_indices = @transform_6, window_bounds = array<i64: 32, 1>}, {transform_indices = @transform_7, window_bounds = array<i64: 1, 32, 128>}]} {
    %c0 = arith.constant 0 : index
    %c0_0 = arith.constant 0 : index
    %c0_1 = arith.constant 0 : index
    %0 = vector.load %arg2[%c0, %c0_0, %c0_1] : memref<1x32x128xf32, #tpu.memory_space<vmem>>, vector<1x32x128xf32>
    %1 = vector.shape_cast %0 : vector<1x32x128xf32> to vector<32x128xf32>
    %2 = arith.truncf %1 : vector<32x128xf32> to vector<32x128xbf16>
    %c0_2 = arith.constant 0 : index
    %c0_3 = arith.constant 0 : index
    %3 = vector.load %arg3[%c0_2, %c0_3] : memref<64x32xbf16, #tpu.memory_space<vmem>>, vector<64x32xbf16>
    %cst = arith.constant dense<0.000000e+00> : vector<64x128xf32>
    %4 = tpu.matmul %3, %2, %cst {dimension_numbers = #tpu.dot_dimension_numbers<[1], [0], [0], [1], [0, 0, 1, 1], [], []>} : vector<64x32xbf16>, vector<32x128xbf16>, vector<64x128xf32> -> vector<64x128xf32>
    %c0_4 = arith.constant 0 : index
    %c0_5 = arith.constant 0 : index
    %5 = vector.load %arg4[%c0_4, %c0_5] : memref<64x1xf32, #tpu.memory_space<vmem>>, vector<64x1xf32>
    %6 = vector.broadcast %5 : vector<64x1xf32> to vector<64x128xf32>
    %7 = arith.addf %4, %6 : vector<64x128xf32>
    %cst_6 = arith.constant 0.000000e+00 : f32
    %8 = vector.broadcast %cst_6 : f32 to vector<64x128xf32>
    %9 = arith.maximumf %7, %8 : vector<64x128xf32>
    %10 = arith.truncf %9 : vector<64x128xf32> to vector<64x128xbf16>
    %c0_7 = arith.constant 0 : index
    %c0_8 = arith.constant 0 : index
    %11 = vector.load %arg5[%c0_7, %c0_8] : memref<64x64xbf16, #tpu.memory_space<vmem>>, vector<64x64xbf16>
    %cst_9 = arith.constant dense<0.000000e+00> : vector<64x128xf32>
    %12 = tpu.matmul %11, %10, %cst_9 {dimension_numbers = #tpu.dot_dimension_numbers<[1], [0], [0], [1], [0, 0, 1, 1], [], []>} : vector<64x64xbf16>, vector<64x128xbf16>, vector<64x128xf32> -> vector<64x128xf32>
    %c0_10 = arith.constant 0 : index
    %c0_11 = arith.constant 0 : index
    %13 = vector.load %arg6[%c0_10, %c0_11] : memref<64x1xf32, #tpu.memory_space<vmem>>, vector<64x1xf32>
    %14 = vector.broadcast %13 : vector<64x1xf32> to vector<64x128xf32>
    %15 = arith.addf %12, %14 : vector<64x128xf32>
    %cst_12 = arith.constant 0.000000e+00 : f32
    %16 = vector.broadcast %cst_12 : f32 to vector<64x128xf32>
    %17 = arith.maximumf %15, %16 : vector<64x128xf32>
    %18 = arith.truncf %17 : vector<64x128xf32> to vector<64x128xbf16>
    %c0_13 = arith.constant 0 : index
    %c0_14 = arith.constant 0 : index
    %19 = vector.load %arg7[%c0_13, %c0_14] : memref<32x64xbf16, #tpu.memory_space<vmem>>, vector<32x64xbf16>
    %cst_15 = arith.constant dense<0.000000e+00> : vector<32x128xf32>
    %20 = tpu.matmul %19, %18, %cst_15 {dimension_numbers = #tpu.dot_dimension_numbers<[1], [0], [0], [1], [0, 0, 1, 1], [], []>} : vector<32x64xbf16>, vector<64x128xbf16>, vector<32x128xf32> -> vector<32x128xf32>
    %c0_16 = arith.constant 0 : index
    %c0_17 = arith.constant 0 : index
    %21 = vector.load %arg8[%c0_16, %c0_17] : memref<32x1xf32, #tpu.memory_space<vmem>>, vector<32x1xf32>
    %22 = vector.broadcast %21 : vector<32x1xf32> to vector<32x128xf32>
    %23 = arith.addf %20, %22 : vector<32x128xf32>
    %c0_18 = arith.constant 0 : index
    %c0_19 = arith.constant 0 : index
    %c0_20 = arith.constant 0 : index
    %24 = vector.load %arg9[%c0_18, %c0_19, %c0_20] : memref<1x32x128xf32, #tpu.memory_space<vmem>>, vector<1x32x128xf32>
    %25 = vector.shape_cast %24 : vector<1x32x128xf32> to vector<32x128xf32>
    %26 = vector.shape_cast %23 : vector<32x128xf32> to vector<1x32x128xf32>
    tpu.vector_store %arg9[%c0_18, %c0_19, %c0_20], %26 {strides = array<i32>} : memref<1x32x128xf32, #tpu.memory_space<vmem>>, vector<1x32x128xf32>,
    return
  }
  func.func @transform_0(%arg0: i32, %arg1: i32) -> (i32, i32, i32) {
    %c0_i32 = arith.constant 0 : i32
    %c0_i32_0 = arith.constant 0 : i32
    return %arg0, %c0_i32, %arg1 : i32, i32, i32
  }
  func.func @transform_1(%arg0: i32, %arg1: i32) -> (i32, i32) {
    %c0_i32 = arith.constant 0 : i32
    %c0_i32_0 = arith.constant 0 : i32
    %c0_i32_1 = arith.constant 0 : i32
    return %c0_i32, %c0_i32_0 : i32, i32
  }
  func.func @transform_2(%arg0: i32, %arg1: i32) -> (i32, i32) {
    %c0_i32 = arith.constant 0 : i32
    %c0_i32_0 = arith.constant 0 : i32
    %c0_i32_1 = arith.constant 0 : i32
    return %c0_i32, %c0_i32_0 : i32, i32
  }
  func.func @transform_3(%arg0: i32, %arg1: i32) -> (i32, i32) {
    %c0_i32 = arith.constant 0 : i32
    %c0_i32_0 = arith.constant 0 : i32
    %c0_i32_1 = arith.constant 0 : i32
    return %c0_i32, %c0_i32_0 : i32, i32
  }
  func.func @transform_4(%arg0: i32, %arg1: i32) -> (i32, i32) {
    %c0_i32 = arith.constant 0 : i32
    %c0_i32_0 = arith.constant 0 : i32
    %c0_i32_1 = arith.constant 0 : i32
    return %c0_i32, %c0_i32_0 : i32, i32
  }
  func.func @transform_5(%arg0: i32, %arg1: i32) -> (i32, i32) {
    %c0_i32 = arith.constant 0 : i32
    %c0_i32_0 = arith.constant 0 : i32
    %c0_i32_1 = arith.constant 0 : i32
    return %c0_i32, %c0_i32_0 : i32, i32
  }
  func.func @transform_6(%arg0: i32, %arg1: i32) -> (i32, i32) {
    %c0_i32 = arith.constant 0 : i32
    %c0_i32_0 = arith.constant 0 : i32
    %c0_i32_1 = arith.constant 0 : i32
    return %c0_i32, %c0_i32_0 : i32, i32
  }
  func.func @transform_7(%arg0: i32, %arg1: i32) -> (i32, i32, i32) {
    %c0_i32 = arith.constant 0 : i32
    %c0_i32_0 = arith.constant 0 : i32
    return %arg0, %c0_i32, %arg1 : i32, i32, i32
  }
}

</mosaic_0001>

<bundles_post_ra>
// kernel: compression_model_forward.1
= control target key start
LH: loop header
LB: loop body
LE: loop exit
PB: predicated region body
PF: predicated region fallthrough
CT: control target
= control target key end

     0   :  { %s1038_s24 = smov 0   ;;  %s1040_s25 = smov 0   ;;  %s1238_s0 = inlined_call_operand.vmem [shape: f32[2,32,256], index: 0, kind: input, shape index: {}]   ;;  %s1239_s1 = inlined_call_operand.vmem [shape: bf16[64,32], index: 1, kind: input, shape index: {}]   ;;  %s1240_s2 = inlined_call_operand.vmem [shape: f32[64,1], index: 2, kind: input, shape index: {}]   ;;  %s1241_s3 = inlined_call_operand.vmem [shape: bf16[64,64], index: 3, kind: input, shape index: {}]   ;;  %s1242_s4 = inlined_call_operand.vmem [shape: f32[64,1], index: 4, kind: input, shape index: {}]   ;;  %s1243_s5 = inlined_call_operand.vmem [shape: bf16[32,64], index: 5, kind: input, shape index: {}]   ;;  %s1244_s6 = inlined_call_operand.vmem [shape: f32[32,1], index: 6, kind: input, shape index: {}]   ;;  %s1245_s7 = inlined_call_operand.vmem [shape: f32[2,32,256], index: 7, kind: output, shape index: {}]  }
   0x1   :  { %s1042_s26 = smov 0   ;;  %s1044_s27 = smov 0  }
   0x2   :  { %s1046_s28 = smov 0   ;;  %s1048_s29 = smov 0  }
   0x3   :  { %s1050_s30 = smov 0  }
   0x4 LB: > { %s26_s8 = sadd.s32 1, %s987_s28  ;;  %s29_s9 = sadd.s32 1, %s991_s29  ;;  %s995_s30 = sphi %s1050_s30, %s17_s30   ;;  %s991_s29 = sphi %s1048_s29, %s1252_s29   ;;  %s987_s28 = sphi %s1046_s28, %s1251_s28   ;;  %s983_s27 = sphi %s1044_s27, %s1250_s27   ;;  %s979_s26 = sphi %s1042_s26, %s1249_s26   ;;  %s975_s25 = sphi %s1040_s25, %s1248_s25   ;;  %s971_s24 = sphi %s1038_s24, %s1247_s24  }
   0x5   : > { %p27_p0 = scmp.ge.s32.totalorder %s26_s8, 2  ;;  %s800_s10 = sadd.s32 4294967295, %s995_s30  }
   0x6   : > { %p45_p1 = scmp.ne.s32.totalorder %s975_s25, %s971_s24  ;;  %p46_p2 = scmp.eq.s32.totalorder %s995_s30, 0 }
   0x7   : > { %s1254_s8 = smov (%p27_p0, %s26_s8), 0  ;;  %s1256_s9 = smov (!%p27_p0, %s29_s9), %s991_s29 }
   0x8   : > { %p31_p3 = scmp.ge.s32.totalorder %s1256_s9, 2  ;;  %p203_p4 = scmp.eq.s32.totalorder %s800_s10, 3 }
   0x9   : > { %s34_s11 = ssub.s32 %s987_s28, %s1254_s8  ;;  %p47_p5 = por %p46_p2, %p45_p1 }
   0xa   : > { %s1258_s9 = smov (%p31_p3, %s1256_s9), 0  ;;  %p1086_p6 = por %p203_p4, %p45_p1 }
   0xb   : > { %s33_s13 = ssub.s32 %s991_s29, %s1258_s9  ;;  %s38_s15 = sadd.s32 1, %s975_s25 }
   0xc   : > { %s35_s14 = sor.u32 %s34_s11, %s33_s13  ;;  %p803_p8 = scmp.ge.s32.totalorder %s995_s30, 4 }
   0xd   : > { %p36_p7 = scmp.eq.s32.totalorder %s35_s14, 0 }
   0xe   : > { %243 = sbr.rel (%p803_p8) target bundleno = 29 (0x1d), region = 40 }
   0xf   : > { %s1094_s16 = scalar_select %p36_p7, %s975_s25, %s38_s15  }
  0x13   : > { %246 = sbr.rel (!%p47_p5) target bundleno = 29 (0x1d), region = 44  ;;  %s248_s17 = sand.u32 (%p47_p5), 1, %s975_s25  }
  0x14   : > { %s805_s18 = sshll.u32 (%p47_p5), %s991_s29, 3  ;;  %s804_s19 = sshll.u32 (%p47_p5), %s248_s17, 5 }
  0x15   : > { %s252_s20 = sadd.s32 (%p47_p5), %s987_s28, %s805_s18  ;;  %s250_s11 = scalar_lea.vmem (%p47_p5), [#allocation2], %s804_s19 }
  0x16   : > { %s806_s21 = sshll.u32 (%p47_p5), %s252_s20, 3 }
  0x17   : > { %s254_s10 = scalar_lea.vmem (%p47_p5), %s1238_s0, %s806_s21 }
  0x18   : > { %v289_v0 = vld [vmem:[%s254_s10] sm:$0xff]  ;;  %v291_v1 = vld [vmem:[%s254_s10 + $0x10] sm:$0xff] }
  0x19   : > { %v293_v2 = vld [vmem:[%s254_s10 + $0x20] sm:$0xff]  ;;  %290 = vst [vmem:[%s250_s11] sm:$0xff] %v289_v0  ;;  %v295_v3 = vld [vmem:[%s254_s10 + $0x30] sm:$0xff] }
  0x1a   : > { %292 = vst [vmem:[%s250_s11 + $0x8] sm:$0xff] %v291_v1 }
  0x1b   : > { %294 = vst [vmem:[%s250_s11 + $0x10] sm:$0xff] %v293_v2 }
  0x1c   : > { %296 = vst [vmem:[%s250_s11 + $0x18] sm:$0xff] %v295_v3 }
  0x1d PF: > { %p807_p9 = scmp.ge.s32.totalorder %s995_s30, 1  ;;  %p301_p10 = scmp.lt.s32.totalorder %s995_s30, 5 }
  0x1f   : > { %p302_p11 = pnand %p807_p9, %p301_p10 }
  0x20   : > { %s308_s15 = sand.u32 (!%p302_p11), 1, %s971_s24  }
  0x21   : > { %305 = sbr.rel (%p302_p11) target bundleno = 592 (0x250), region = 82  ;;  %s1112_s19 = sshll.u32 (!%p302_p11), %s308_s15, 5 }
  0x22   : > { %s310_s20 = scalar_lea.vmem (!%p302_p11), [#allocation2], %s1112_s19  ;;  %s337_s15 = scalar_lea.vmem (!%p302_p11), [#allocation3], %s1112_s19 }
  0x26   : > { %v359_v4 = vld [vmem:[%s1240_s2 + $0x30] sm:$0xff]  ;;  %v357_v5 = vld [vmem:[%s1240_s2 + $0x20] sm:$0xff]  ;;  %v997_v6 = vmov 0   ;;  %v342_v8 = vld [vmem:[%s310_s20 + $0x18] sm:$0xff]  ;;  %vm421_vm0 = vcmask 261120   ;;  %vm551_vm1 = vcmask 523264  }
  0x27   : > { %938 = vset.pattern.permute.xlu0 %v997_v6  ;;  %939 = vset.pattern.permute.xlu1 %v997_v6  ;;  %v341_v7 = vld [vmem:[%s310_s20 + $0x10] sm:$0xff]  ;;  %v339_v9 = vld [vmem:[%s310_s20] sm:$0xff]  ;;  %v340_v11 = vld [vmem:[%s310_s20 + $0x8] sm:$0xff]  ;;  %s861_s17 = sshll.u32 (%p1086_p6), %s983_s27, 3 }
  0x28   : > { %393 = vperm.xlu0 %938, %v359_v4   ;;  %383 = vperm.xlu1 %939, %v357_v5   ;;  %v344_v10 = vpack.c.bf16 %v342_v8, %v341_v7  ;;  %v355_v12 = vld [vmem:[%s1240_s2 + $0x10] sm:$0xff]  ;;  %v343_v13 = vpack.c.bf16 %v340_v11, %v339_v9  ;;  %v360_v14 = vld [vmem:[%s1240_s2 + $0x38] sm:$0xff]  ;;  %v358_v15 = vld [vmem:[%s1240_s2 + $0x28] sm:$0xff]  ;;  %s680_s19 = sadd.s32 (%p1086_p6), %s979_s26, %s861_s17 }
  0x29   : > { %940 = vset.pattern.permute.xlu2 %v997_v6  ;;  %v865_v16 = vld [vmem:[%s1239_s1] sm:$0xff]  ;;  %v868_v17 = vld [vmem:[%s1239_s1 + $0x18] sm:$0xff]  ;;  %v354_v20 = vld [vmem:[%s1240_s2 + $0x8] sm:$0xff]  ;;  %s862_s18 = sshll.u32 (%p1086_p6), %s680_s19, 3 }
  0x2a   : > { %440 = vmatpush.bf16.msra.mxu0 %v344_v10  ;;  %875 = vmatpush.bf16.msra.mxu1 %v344_v10  ;;  %v356_v18 = vld [vmem:[%s1240_s2 + $0x18] sm:$0xff]  ;;  %v353_v19 = vld [vmem:[%s1240_s2] sm:$0xff]  ;;  %v489_v21 = vld [vmem:[%s1242_s4 + $0x30] sm:$0xff]  ;;  %s682_s21 = scalar_lea.vmem (%p1086_p6), %s1245_s7, %s862_s18 }
  0x2b   : > { %373 = vperm.xlu2 %940, %v355_v12   ;;  %v490_v22 = vld [vmem:[%s1242_s4 + $0x38] sm:$0xff]  ;;  %v487_v23 = vld [vmem:[%s1242_s4 + $0x20] sm:$0xff]  ;;  %v866_v24 = vld [vmem:[%s1239_s1 + $0x8] sm:$0xff] }
  0x2c   : > { %v488_v25 = vld [vmem:[%s1242_s4 + $0x28] sm:$0xff]  ;;  %v485_v26 = vld [vmem:[%s1242_s4 + $0x10] sm:$0xff]  ;;  %v486_v27 = vld [vmem:[%s1242_s4 + $0x18] sm:$0xff] }
  0x2d   : > { %v483_v28 = vld [vmem:[%s1242_s4] sm:$0xff]  ;;  %v484_v29 = vld [vmem:[%s1242_s4 + $0x8] sm:$0xff]  ;;  %v867_v31 = vld [vmem:[%s1239_s1 + $0x10] sm:$0xff] }
  0x2e   : > { %441 = vmatpush.bf16.msra.mxu0 %v343_v13  ;;  %876 = vmatpush.bf16.msra.mxu1 %v343_v13  ;;  %v609_v30 = vld [vmem:[%s1244_s6] sm:$0xff]  ;;  %v610_v32 = vld [vmem:[%s1244_s6 + $0x8] sm:$0xff]  ;;  %v611_v33 = vld [vmem:[%s1244_s6 + $0x10] sm:$0xff] }
  0x2f   : > { %v612_v34 = vld [vmem:[%s1244_s6 + $0x18] sm:$0xff]  ;;  %v869_v7 = vld [vmem:[%s1241_s3] sm:$0xff]  ;;  %v870_v8 = vld [vmem:[%s1241_s3 + $0x8] sm:$0xff] }
  0x30   : > { %398 = vperm.xlu0 %938, %v360_v14   ;;  %388 = vperm.xlu1 %939, %v358_v15   ;;  %v871_v9 = vld [vmem:[%s1241_s3 + $0x10] sm:$0xff]  ;;  %v872_v10 = vld [vmem:[%s1241_s3 + $0x18] sm:$0xff] }
  0x31   : > { %826 = vmatmul.msk.bf16.vlgmr.msra.gmra.mxu0 %vm421_vm0, %v865_v16  ;;  %829 = vmatmul.msk.bf16.vlgmr.msra.gmra.mxu1 %vm421_vm0, %v868_v17 }
  0x33   : > { %378 = vperm.xlu2 %940, %v356_v18  }
  0x38   : > { %363 = vperm.xlu0 %938, %v353_v19   ;;  %368 = vperm.xlu1 %939, %v354_v20  }
  0x3b   : > { %523 = vperm.xlu2 %940, %v489_v21  }
  0x40   : > { %528 = vperm.xlu0 %938, %v490_v22   ;;  %513 = vperm.xlu1 %939, %v487_v23  }
  0x41   : > { %827 = vmatmul.msk.bf16.gmra.mxu0 %vm421_vm0, %v866_v24 }
  0x43   : > { %518 = vperm.xlu2 %940, %v488_v25  }
  0x48   : > { %503 = vperm.xlu0 %938, %v485_v26   ;;  %508 = vperm.xlu1 %939, %v486_v27  }
  0x4b   : > { %493 = vperm.xlu2 %940, %v483_v28  }
  0x50   : > { %498 = vperm.xlu0 %938, %v484_v29   ;;  %615 = vperm.xlu1 %939, %v609_v30  }
  0x51   : > { %828 = vmatmul.msk.bf16.gmra.mxu0 %vm421_vm0, %v867_v31 }
  0x53   : > { %620 = vperm.xlu2 %940, %v610_v32  }
  0x58   : > { %625 = vperm.xlu0 %938, %v611_v33   ;;  %630 = vperm.xlu1 %939, %v612_v34  }
  0x85   : > { %v374_v49 = vpop.permute.xlu2 %373 }
  0x8d   : > { %v379_v53 = vpop.permute.xlu2 %378 }
  0x95   : > { %v524_v16 = vpop.permute.xlu2 %523 }
  0x9a   : > { %v394_v35 = vpop.permute.xlu0 %393  ;;  %v384_v47 = vpop.permute.xlu1 %383 }
  0x9d   : > { %v519_v22 = vpop.permute.xlu2 %518 }
  0xa2   : > { %v399_v40 = vpop.permute.xlu0 %398  ;;  %v389_v51 = vpop.permute.xlu1 %388 }
  0xaa   : > { %v369_v60 = vpop.permute.xlu1 %368  ;;  %v364_v0 = vpop.permute.xlu0 %363 }
  0xae   : > { %v443_v36 = vpop.f32.mrf.mxu0  ;;  %v458_v37 = vpop.f32.mrf.mxu1 }
  0xaf   : > { %v459_v38 = vadd.f32 %v458_v37, %v394_v35  ;;  %v444_v1 = vadd.f32 %v443_v36, %v364_v0 }
  0xb1   : > { %v469_v42 = vmax.f32 %v459_v38, 0.0  ;;  %v463_v5 = vmax.f32 %v444_v1, 0.0 }
  0xb2   : > { %v529_v15 = vpop.permute.xlu0 %528  ;;  %v514_v18 = vpop.permute.xlu1 %513 }
  0xb6   : > { %v445_v39 = vpop.f32.mrf.mxu0  ;;  %v460_v41 = vpop.f32.mrf.mxu1 }
  0xb7   : > { %v461_v43 = vadd.f32 %v460_v41, %v399_v40  ;;  %v446_v61 = vadd.f32 %v445_v39, %v369_v60  ;;  %v494_v40 = vpop.permute.xlu2 %493 }
  0xb9   : > { %v470_v44 = vmax.f32 %v461_v43, 0.0  ;;  %v464_v3 = vmax.f32 %v446_v61, 0.0 }
  0xba   : > { %v504_v20 = vpop.permute.xlu0 %503  ;;  %v509_v29 = vpop.permute.xlu1 %508 }
  0xbb   : > { %v474_v45 = vpack.c.bf16 %v470_v44, %v469_v42  ;;  %v471_v6 = vpack.c.bf16 %v464_v3, %v463_v5 }
  0xbd   : > { %568 = vmatpush.bf16.msrb.mxu1 %v474_v45  ;;  %877 = vmatpush.bf16.msra.mxu3 %v474_v45 }
  0xbe   : > { %v448_v46 = vpop.f32.mrf.mxu0 }
  0xbf   : > { %v449_v57 = vadd.f32 %v448_v46, %v374_v49 }
  0xc1   : > { %v465_v2 = vmax.f32 %v449_v57, 0.0 }
  0xc2   : > { %v499_v36 = vpop.permute.xlu0 %498  ;;  %v616_v49 = vpop.permute.xlu1 %615 }
  0xc6   : > { %v450_v48 = vpop.f32.mrf.mxu0 }
  0xc7   : > { %v451_v55 = vadd.f32 %v450_v48, %v379_v53  ;;  %v874_v48 = vld [vmem:[%s1243_s5 + $0x8] sm:$0xff] }
  0xc9   : > { %v466_v62 = vmax.f32 %v451_v55, 0.0 }
  0xca   : > { %v626_v55 = vpop.permute.xlu0 %625 }
  0xcb   : > { %v472_v4 = vpack.c.bf16 %v466_v62, %v465_v2 }
  0xce   : > { %v453_v50 = vpop.f32.mrf.mxu0 }
  0xcf   : > { %v454_v52 = vadd.f32 %v453_v50, %v384_v47  ;;  %v873_v47 = vld [vmem:[%s1243_s5] sm:$0xff] }
  0xd1   : > { %v467_v58 = vmax.f32 %v454_v52, 0.0  ;;  %v621_v52 = vpop.permute.xlu2 %620 }
  0xd6   : > { %v455_v54 = vpop.f32.mrf.mxu0 }
  0xd7   : > { %v456_v56 = vadd.f32 %v455_v54, %v389_v51 }
  0xd9   : > { %v468_v59 = vmax.f32 %v456_v56, 0.0 }
  0xdb   : > { %v473_v63 = vpack.c.bf16 %v468_v59, %v467_v58  ;;  %v631_v58 = vpop.permute.xlu1 %630 }
  0xdd   : > { %569 = vmatpush.bf16.msrb.mxu1 %v473_v63  ;;  %878 = vmatpush.bf16.msra.mxu3 %v473_v63 }
  0xe1   : > { %570 = vmatpush.bf16.msrb.mxu1 %v472_v4  ;;  %879 = vmatpush.bf16.msra.mxu3 %v472_v4 }
  0xe5   : > { %571 = vmatpush.bf16.msrb.mxu1 %v471_v6  ;;  %880 = vmatpush.bf16.msra.mxu3 %v471_v6 }
  0xe8   : > { %846 = vmatmul.msk.bf16.vlgmr.msrb.gmra.mxu1 %vm551_vm1, %v869_v7  ;;  %847 = vmatmul.msk.bf16.vlgmr.msra.gmra.mxu3 %vm551_vm1, %v870_v8 }
  0xf8   : > { %848 = vmatmul.msk.bf16.gmra.mxu3 %vm551_vm1, %v871_v9 }
 0x108   : > { %849 = vmatmul.msk.bf16.gmra.mxu3 %vm551_vm1, %v872_v10 }
 0x165   : > { %v573_v19 = vpop.f32.mrf.mxu1 }
 0x166   : > { %v574_v41 = vadd.f32 %v573_v19, %v494_v40 }
 0x168   : > { %v593_v45 = vmax.f32 %v574_v41, 0.0 }
 0x16b   : > { %v578_v11 = vpop.f32.mrf.mxu3 }
 0x16c   : > { %v579_v34 = vadd.f32 %v578_v11, %v504_v20 }
 0x16d   : > { %v575_v33 = vpop.f32.mrf.mxu1 }
 0x16e   : > { %v576_v37 = vadd.f32 %v575_v33, %v499_v36  ;;  %v595_v42 = vmax.f32 %v579_v34, 0.0 }
 0x170   : > { %v594_v43 = vmax.f32 %v576_v37, 0.0 }
 0x172   : > { %v601_v46 = vpack.c.bf16 %v594_v43, %v593_v45 }
 0x173   : > { %v580_v12 = vpop.f32.mrf.mxu3 }
 0x174   : > { %v581_v30 = vadd.f32 %v580_v12, %v509_v29 }
 0x176   : > { %v596_v38 = vmax.f32 %v581_v30, 0.0 }
 0x178   : > { %v602_v44 = vpack.c.bf16 %v596_v38, %v595_v42 }
 0x17b   : > { %v583_v13 = vpop.f32.mrf.mxu3 }
 0x17c   : > { %v584_v26 = vadd.f32 %v583_v13, %v514_v18 }
 0x17e   : > { %v597_v35 = vmax.f32 %v584_v26, 0.0 }
 0x183   : > { %v585_v14 = vpop.f32.mrf.mxu3 }
 0x184   : > { %v586_v24 = vadd.f32 %v585_v14, %v519_v22 }
 0x186   : > { %v598_v31 = vmax.f32 %v586_v24, 0.0 }
 0x188   : > { %v603_v39 = vpack.c.bf16 %v598_v31, %v597_v35 }
 0x18b   : > { %v588_v17 = vpop.f32.mrf.mxu3 }
 0x18c   : > { %v589_v21 = vadd.f32 %v588_v17, %v524_v16 }
 0x18e   : > { %v599_v27 = vmax.f32 %v589_v21, 0.0 }
 0x193   : > { %v590_v23 = vpop.f32.mrf.mxu3 }
 0x194   : > { %v591_v25 = vadd.f32 %v590_v23, %v529_v15 }
 0x196   : > { %v600_v28 = vmax.f32 %v591_v25, 0.0 }
 0x198   : > { %v604_v32 = vpack.c.bf16 %v600_v28, %v599_v27 }
 0x19a   : > { %653 = vmatpush.bf16.msra.mxu2 %v604_v32 }
 0x19e   : > { %654 = vmatpush.bf16.msra.mxu2 %v603_v39 }
 0x1a2   : > { %655 = vmatpush.bf16.msra.mxu2 %v602_v44 }
 0x1a6   : > { %656 = vmatpush.bf16.msra.mxu2 %v601_v46 }
 0x1a9   : > { %858 = vmatmul.msk.bf16.vlgmr.msra.gmra.mxu2 %vm551_vm1, %v873_v47 }
 0x1b9   : > { %859 = vmatmul.msk.bf16.gmra.mxu2 %vm551_vm1, %v874_v48 }
 0x22c   : > { %v658_v50 = vpop.f32.mrf.mxu2 }
 0x22d   : > { %v659_v51 = vadd.f32 %v658_v50, %v616_v49 }
 0x22f   : > { %668 = vst [vmem:[%s337_s15] sm:$0xff] %v659_v51 }
 0x234   : > { %v660_v53 = vpop.f32.mrf.mxu2 }
 0x235   : > { %v661_v54 = vadd.f32 %v660_v53, %v621_v52 }
 0x236   : > { %v717_v61 = vld [vmem:[%s337_s15] sm:$0xff] (%p1086_p6) }
 0x237   : > { %669 = vst [vmem:[%s337_s15 + $0x8] sm:$0xff] %v661_v54 }
 0x238   : > { %718 = vst [vmem:[%s682_s21] sm:$0xff] (%p1086_p6), %v717_v61 }
 0x23c   : > { %v663_v56 = vpop.f32.mrf.mxu2 }
 0x23d   : > { %v664_v57 = vadd.f32 %v663_v56, %v626_v55 }
 0x23e   : > { %v719_v62 = vld [vmem:[%s337_s15 + $0x8] sm:$0xff] (%p1086_p6) }
 0x23f   : > { %670 = vst [vmem:[%s337_s15 + $0x10] sm:$0xff] %v664_v57 }
 0x240   : > { %720 = vst [vmem:[%s682_s21 + $0x10] sm:$0xff] (%p1086_p6), %v719_v62 }
 0x243   : > { %678 = sbr.rel (!%p1086_p6) target bundleno = 592 (0x250), region = 90 }
 0x244   : > { %v665_v59 = vpop.f32.mrf.mxu2 }
 0x245   : > { %v666_v60 = vadd.f32 %v665_v59, %v631_v58 }
 0x246   : > { %v721_v63 = vld [vmem:[%s337_s15 + $0x10] sm:$0xff] (%p1086_p6) }
 0x247   : > { %671 = vst [vmem:[%s337_s15 + $0x18] sm:$0xff] %v666_v60 }
 0x248   : > { %722 = vst [vmem:[%s682_s21 + $0x20] sm:$0xff] %v721_v63 }
 0x24e   : > { %v723_v0 = vld [vmem:[%s337_s15 + $0x18] sm:$0xff] }
 0x24f   : > { %724 = vst [vmem:[%s682_s21 + $0x30] sm:$0xff] %v723_v0 }
 0x250 PF: > { %s17_s30 = sadd.s32 1, %s995_s30   ;;  %s1247_s24 = smov %s975_s25 }
 0x251   : > { %p14_p12 = scmp.ge.s32.totalorder %s17_s30, 6   ;;  %s1248_s25 = smov %s1094_s16 }
 0x252   : > { %s1249_s26 = smov %s987_s28  ;;  %s1250_s27 = smov %s991_s29 }
 0x253   : > { %s1251_s28 = smov %s1254_s8  ;;  %s1252_s29 = smov %s1258_s9 }
 0x254   :  { %16 = sbr.rel (!%p14_p12) target bundleno = 4 (0x4), region = 159 }

</bundles_post_ra>
